<compile_context>
chip_gen: v7x
topology: tpu7x:2x2x1
jax: 0.10.0
libtpu: 0.0.40
codegen_flags: <defaults>
</compile_context>

<pallas_src>
import functools

import jax
import jax.numpy as jnp
from jax import lax
from jax.experimental import pallas as pl
from jax.experimental.pallas import tpu as pltpu


# --------------------------------------------------------------------------
# Pass 1: blended 2x2 max/avg pooling.
# --------------------------------------------------------------------------
def _pool_kernel(alpha_ref, x_ref, o_ref, *, W, w2):
    # alpha_ref: (1,)        SMEM  blend scalar
    # x_ref:     (tr, 2*W)   VMEM  row r=(b,c,i): [x[b,c,2i,:], x[b,c,2i+1,:]]
    # o_ref:     (tr, w2)    VMEM  pooled row, feature order j=0..w2-1
    f32 = jnp.float32
    xb = x_ref[...].astype(f32)                    # (tr, 2W)
    r0 = xb[:, :W]                                 # H-even row
    r1 = xb[:, W:]                                 # H-odd row
    vmax = jnp.maximum(r0, r1)                     # (tr, W) vertical max
    vsum = r0 + r1                                 # (tr, W) vertical sum

    # 0/1 selection matrices for the horizontal 2->1 downsample (MXU).
    w_idx = lax.broadcasted_iota(jnp.int32, (W, w2), 0)
    j_idx = lax.broadcasted_iota(jnp.int32, (W, w2), 1)
    sel_even = (w_idx == 2 * j_idx).astype(f32)        # picks column 2j
    sel_odd = (w_idx == 2 * j_idx + 1).astype(f32)     # picks column 2j+1

    dn = (((1,), (0,)), ((), ()))
    he = lax.dot_general(vmax, sel_even, dn, preferred_element_type=f32)
    ho = lax.dot_general(vmax, sel_odd, dn, preferred_element_type=f32)
    hmax = jnp.maximum(he, ho)                                     # 2x2 max
    hsum = lax.dot_general(vsum, sel_even + sel_odd, dn,
                           preferred_element_type=f32)             # 2x2 sum

    alpha = alpha_ref[0]
    beta = (1.0 - alpha) * 0.25                     # folds the /4 of the avg
    o_ref[...] = (alpha * hmax + beta * hsum).astype(o_ref.dtype)


# --------------------------------------------------------------------------
# Pass 2: classifier matmul with an F-reduction grid axis.
# --------------------------------------------------------------------------
def _classifier_kernel(p_ref, w_ref, b_ref, o_ref, acc_ref, *,
                       F, tk, mask_k, mxu_dtype):
    # p_ref: (tb, tk)  pooled features tile
    # w_ref: (tc, tk)  classifier weight tile (PyTorch (out, in) layout)
    # b_ref: (1, tc)   classifier bias tile
    # o_ref: (tb, tc)  logits tile
    # acc_ref: (tb, tc) f32 accumulator scratch
    k = pl.program_id(2)

    @pl.when(k == 0)
    def _():
        acc_ref[...] = jnp.zeros_like(acc_ref)

    p = p_ref[...]
    wt = w_ref[...]

    if mask_k:
        # Last K tile is partial: zero BOTH operands past F so stale buffer
        # contents (possibly NaN/Inf) cannot reach the accumulator.
        col_p = k * tk + lax.broadcasted_iota(jnp.int32, p.shape, 1)
        p = jnp.where(col_p < F, p, jnp.zeros_like(p))
        col_w = k * tk + lax.broadcasted_iota(jnp.int32, wt.shape, 1)
        wt = jnp.where(col_w < F, wt, jnp.zeros_like(wt))

    if mxu_dtype is not None:
        p = p.astype(mxu_dtype)
        wt = wt.astype(mxu_dtype)
    elif p.dtype != wt.dtype:
        ct = jnp.promote_types(p.dtype, wt.dtype)
        p = p.astype(ct)
        wt = wt.astype(ct)

    # (tb, tk) x (tc, tk)^T -> (tb, tc), f32 MXU accumulation; PyTorch-layout
    # weight needs no wrapper-side transpose.
    acc_ref[...] += lax.dot_general(p, wt, (((1,), (1,)), ((), ())),
                                    preferred_element_type=jnp.float32)

    @pl.when(k == pl.num_programs(2) - 1)
    def _():
        o_ref[...] = (acc_ref[...] + b_ref[...].astype(jnp.float32)
                      ).astype(o_ref.dtype)


# --------------------------------------------------------------------------
# Wrapper.
# --------------------------------------------------------------------------
def adaptive_downsample_conv_head(x, alpha, w, b, *,
                                  block_b=128, block_c=256, block_k=2048,
                                  mxu_dtype=None):
    """Forward pass of AdaptiveDownsampleConvHead.

    Args:
      x:     (B, C, H, W) input features.
      alpha: scalar (or shape (1,)) blend parameter.
      w:     (num_classes, C*ceil(H/2)*ceil(W/2)) Linear weight (PyTorch layout).
      b:     (num_classes,) Linear bias.
      mxu_dtype: optional dtype (e.g. jnp.bfloat16) for the classifier MXU
        operands; pooling math and accumulation stay f32.
    Returns:
      (B, num_classes) logits.
    """
    B, C, H, W = x.shape
    # TODO(synk): PyTorch adaptive pooling with odd H or W uses overlapping,
    # variable-size bins; only the even case (regular 2x2/stride-2) is done.
    assert H % 2 == 0 and W % 2 == 0, "odd spatial dims not supported"
    h2, w2 = H // 2, W // 2
    F = C * h2 * w2
    N = w.shape[0]
    assert w.shape == (N, F) and b.shape == (N,)

    alpha_s = jnp.asarray(alpha, dtype=jnp.float32).reshape(1)

    # ---------------- pass 1: pooling ----------------
    # Free (contiguous) reshape: row r = (b, c, i) holds the two H-rows of the
    # 2x2 windows; no transpose, no extra HBM copy of x.
    R = B * C * h2
    x_flat = x.reshape(R, 2 * W)

    row_bytes = 2 * W * x.dtype.itemsize
    tr_cap = max(8, (4 * 1024 * 1024) // max(row_bytes, 1))   # ~4 MiB / buffer
    tr_cap = max(8, (tr_cap // 8) * 8)
    tr = R if R <= tr_cap else tr_cap          # full-dim block is always legal

    pool_vmem = 2 * tr * 2 * W * x.dtype.itemsize + 2 * tr * w2 * x.dtype.itemsize
    pool_limit = int(min(48 * 1024 * 1024, max(2 * pool_vmem, 16 * 1024 * 1024)))

    pooled2d = pl.pallas_call(
        functools.partial(_pool_kernel, W=W, w2=w2),
        out_shape=jax.ShapeDtypeStruct((R, w2), x.dtype),
        grid=(pl.cdiv(R, tr),),
        in_specs=[
            pl.BlockSpec(memory_space=pltpu.MemorySpace.SMEM),       # alpha
            pl.BlockSpec((tr, 2 * W), lambda i: (i, 0)),             # x rows
        ],
        out_specs=pl.BlockSpec((tr, w2), lambda i: (i, 0)),
        compiler_params=pltpu.CompilerParams(
            dimension_semantics=("parallel",),
            vmem_limit_bytes=pool_limit),
        cost_estimate=pl.CostEstimate(
            flops=int(6 * R * W * w2 + 4 * R * W),
            transcendentals=0,
            bytes_accessed=int(R * 2 * W * x.dtype.itemsize
                               + R * w2 * x.dtype.itemsize)),
    )(alpha_s, x_flat)

    # Free reshape: (B*C*h2, w2) -> (B, C*h2*w2) == pool_output.view(B, -1).
    pooled = pooled2d.reshape(B, F)

    # ---------------- pass 2: classifier ----------------
    # Full-dim blocks when the axis is small (always legal); otherwise fixed
    # tiles (multiples of 8 / 128). Small-batch padding intentionally skipped:
    # a full-dim (B, tk) block is legal and the MXU under-use only occurs when
    # the whole problem is tiny.
    tb = B if B <= block_b else block_b
    tc = N if N <= block_c else block_c
    tk = F if F <= block_k else block_k
    mask_k = (F % tk) != 0

    b2 = b.reshape(1, N)

    p_isz = pooled.dtype.itemsize
    w_isz = w.dtype.itemsize
    mm_vmem = (2 * (tb * tk * p_isz + tc * tk * w_isz + tc * b.dtype.itemsize)
               + 2 * tb * tc * x.dtype.itemsize + tb * tc * 4)
    mm_limit = int(min(48 * 1024 * 1024, max(2 * mm_vmem, 16 * 1024 * 1024)))

    grid = (pl.cdiv(B, tb), pl.cdiv(N, tc), pl.cdiv(F, tk))   # F innermost

    out = pl.pallas_call(
        functools.partial(_classifier_kernel, F=F, tk=tk, mask_k=mask_k,
                          mxu_dtype=mxu_dtype),
        out_shape=jax.ShapeDtypeStruct((B, N), x.dtype),
        grid=grid,
        in_specs=[
            pl.BlockSpec((tb, tk), lambda bi, ci, k: (bi, k)),   # pooled
            pl.BlockSpec((tc, tk), lambda bi, ci, k: (ci, k)),   # weight
            pl.BlockSpec((1, tc), lambda bi, ci, k: (0, ci)),    # bias
        ],
        out_specs=pl.BlockSpec((tb, tc), lambda bi, ci, k: (bi, ci)),
        scratch_shapes=[pltpu.VMEM((tb, tc), jnp.float32)],
        compiler_params=pltpu.CompilerParams(
            dimension_semantics=("parallel", "parallel", "arbitrary"),
            vmem_limit_bytes=mm_limit),
        cost_estimate=pl.CostEstimate(
            flops=int(2 * B * F * N),
            transcendentals=0,
            bytes_accessed=int(B * F * p_isz + N * F * w_isz
                               + N * b.dtype.itemsize
                               + B * N * x.dtype.itemsize)),
    )(pooled, w, b2)

    return out


# --------------------------------------------------------------------------
# Reference + test.
# --------------------------------------------------------------------------
def _reference(x, alpha, w, b):
    B, C, H, W = x.shape
    h2, w2 = H // 2, W // 2
    xr = x.astype(jnp.float32).reshape(B, C, h2, 2, w2, 2)
    mx = xr.max(axis=(3, 5))
    av = xr.mean(axis=(3, 5))
    pooled = alpha * mx + (1.0 - alpha) * av
    feat = pooled.reshape(B, -1)
    return feat @ w.T.astype(jnp.float32) + b


if __name__ == "__main__":
    # Small shapes consistent with the module: x is (B, C, H, W).
    B, C, H, W = 2, 4, 16, 16
    num_classes = 10
    h2, w2 = H // 2, W // 2
    F = C * h2 * w2

    key = jax.random.PRNGKey(0)
    kx, ka, kw, kb = jax.random.split(key, 4)

    x = jax.random.normal(kx, (B, C, H, W), dtype=jnp.float32)
    alpha = jax.random.uniform(ka, (1,), dtype=jnp.float32)       # torch.rand(1)

    # Linear params (torch default init: U(-1/sqrt(F), 1/sqrt(F))).
    bound = 1.0 / (F ** 0.5)
    w = jax.random.uniform(kw, (num_classes, F), dtype=jnp.float32,
                           minval=-bound, maxval=bound)
    b = jax.random.uniform(kb, (num_classes,), dtype=jnp.float32,
                           minval=-bound, maxval=bound)

    fwd = jax.jit(adaptive_downsample_conv_head)
    out = jax.block_until_ready(fwd(x, alpha, w, b))

    ref = _reference(x, alpha, w, b)
    assert out.shape == (B, num_classes)
    assert jnp.allclose(out, ref, atol=1e-4, rtol=1e-4)

    print("KERNEL_OK")
</pallas_src>

<mosaic_0001>
module attributes {stable_mosaic.version = 11 : i64} {
  func.func @_pool_kernel(%arg0: i32, %arg1: memref<1xf32, #tpu.memory_space<smem>>, %arg2: memref<64x32xf32, #tpu.memory_space<vmem>>, %arg3: memref<64x8xf32, #tpu.memory_space<vmem>>) attributes {dimension_semantics = [#tpu.dimension_semantics<parallel>], iteration_bounds = array<i64: 1>, scalar_prefetch = 0 : i64, scratch_operands = 0 : i64, tpu.core_type = #tpu.core_type<tc>, window_params = [{transform_indices = @transform_0, window_bounds = array<i64: 1>}, {transform_indices = @transform_1, window_bounds = array<i64: 64, 32>}, {transform_indices = @transform_2, window_bounds = array<i64: 64, 8>}]} {
    %c0 = arith.constant 0 : index
    %c0_0 = arith.constant 0 : index
    %0 = vector.load %arg2[%c0, %c0_0] : memref<64x32xf32, #tpu.memory_space<vmem>>, vector<64x32xf32>
    %1 = vector.extract_strided_slice %0 {offsets = [0, 0], sizes = [64, 16], strides = [1, 1]} : vector<64x32xf32> to vector<64x16xf32>
    %2 = vector.extract_strided_slice %0 {offsets = [0, 16], sizes = [64, 16], strides = [1, 1]} : vector<64x32xf32> to vector<64x16xf32>
    %3 = arith.maximumf %1, %2 : vector<64x16xf32>
    %4 = arith.addf %1, %2 : vector<64x16xf32>
    %5 = tpu.iota {dimensions = array<i32: 0>} : vector<16x8xi32>
    %6 = tpu.iota {dimensions = array<i32: 1>} : vector<16x8xi32>
    %c2_i32 = arith.constant 2 : i32
    %7 = vector.broadcast %c2_i32 : i32 to vector<16x8xi32>
    %8 = arith.muli %7, %6 : vector<16x8xi32>
    %9 = arith.cmpi eq, %5, %8 : vector<16x8xi32>
    %10 = arith.extui %9 : vector<16x8xi1> to vector<16x8xi32>
    %11 = arith.sitofp %10 : vector<16x8xi32> to vector<16x8xf32>
    %c2_i32_1 = arith.constant 2 : i32
    %12 = vector.broadcast %c2_i32_1 : i32 to vector<16x8xi32>
    %13 = arith.muli %12, %6 : vector<16x8xi32>
    %c1_i32 = arith.constant 1 : i32
    %14 = vector.broadcast %c1_i32 : i32 to vector<16x8xi32>
    %15 = arith.addi %13, %14 : vector<16x8xi32>
    %16 = arith.cmpi eq, %5, %15 : vector<16x8xi32>
    %17 = arith.extui %16 : vector<16x8xi1> to vector<16x8xi32>
    %18 = arith.sitofp %17 : vector<16x8xi32> to vector<16x8xf32>
    %cst = arith.constant dense<0.000000e+00> : vector<64x8xf32>
    %19 = tpu.matmul %3, %11, %cst {dimension_numbers = #tpu.dot_dimension_numbers<[1], [0], [0], [1], [0, 0, 1, 1], [], []>} : vector<64x16xf32>, vector<16x8xf32>, vector<64x8xf32> -> vector<64x8xf32>
    %cst_2 = arith.constant dense<0.000000e+00> : vector<64x8xf32>
    %20 = tpu.matmul %3, %18, %cst_2 {dimension_numbers = #tpu.dot_dimension_numbers<[1], [0], [0], [1], [0, 0, 1, 1], [], []>} : vector<64x16xf32>, vector<16x8xf32>, vector<64x8xf32> -> vector<64x8xf32>
    %21 = arith.maximumf %19, %20 : vector<64x8xf32>
    %22 = arith.addf %11, %18 : vector<16x8xf32>
    %cst_3 = arith.constant dense<0.000000e+00> : vector<64x8xf32>
    %23 = tpu.matmul %4, %22, %cst_3 {dimension_numbers = #tpu.dot_dimension_numbers<[1], [0], [0], [1], [0, 0, 1, 1], [], []>} : vector<64x16xf32>, vector<16x8xf32>, vector<64x8xf32> -> vector<64x8xf32>
    %c0_4 = arith.constant 0 : index
    %24 = memref.load %arg1[%c0_4] : memref<1xf32, #tpu.memory_space<smem>>
    %cst_5 = arith.constant 1.000000e+00 : f32
    %25 = arith.subf %cst_5, %24 : f32
    %cst_6 = arith.constant 2.500000e-01 : f32
    %26 = arith.mulf %25, %cst_6 : f32
    %27 = vector.broadcast %24 : f32 to vector<64x8xf32>
    %28 = arith.mulf %27, %21 : vector<64x8xf32>
    %29 = vector.broadcast %26 : f32 to vector<64x8xf32>
    %30 = arith.mulf %29, %23 : vector<64x8xf32>
    %31 = arith.addf %28, %30 : vector<64x8xf32>
    %c0_7 = arith.constant 0 : index
    %c0_8 = arith.constant 0 : index
    %32 = vector.load %arg3[%c0_7, %c0_8] : memref<64x8xf32, #tpu.memory_space<vmem>>, vector<64x8xf32>
    tpu.vector_store %arg3[%c0_7, %c0_8], %31 {strides = array<i32>} : memref<64x8xf32, #tpu.memory_space<vmem>>, vector<64x8xf32>,
    return
  }
  func.func @transform_0(%arg0: i32) -> i32 {
    %c0_i32 = arith.constant 0 : i32
    %c0_i32_0 = arith.constant 0 : i32
    return %c0_i32 : i32
  }
  func.func @transform_1(%arg0: i32) -> (i32, i32) {
    %c0_i32 = arith.constant 0 : i32
    %c0_i32_0 = arith.constant 0 : i32
    return %arg0, %c0_i32 : i32, i32
  }
  func.func @transform_2(%arg0: i32) -> (i32, i32) {
    %c0_i32 = arith.constant 0 : i32
    %c0_i32_0 = arith.constant 0 : i32
    return %arg0, %c0_i32 : i32, i32
  }
}

module attributes {stable_mosaic.version = 11 : i64} {
  func.func @_classifier_kernel(%arg0: i32, %arg1: i32, %arg2: i32, %arg3: memref<2x256xf32, #tpu.memory_space<vmem>>, %arg4: memref<10x256xf32, #tpu.memory_space<vmem>>, %arg5: memref<1x10xf32, #tpu.memory_space<vmem>>, %arg6: memref<2x10xf32, #tpu.memory_space<vmem>>, %arg7: memref<2x10xf32, #tpu.memory_space<vmem>>) attributes {dimension_semantics = [#tpu.dimension_semantics<parallel>, #tpu.dimension_semantics<parallel>, #tpu.dimension_semantics<arbitrary>], iteration_bounds = array<i64: 1, 1, 1>, scalar_prefetch = 0 : i64, scratch_operands = 1 : i64, tpu.core_type = #tpu.core_type<tc>, window_params = [{transform_indices = @transform_0, window_bounds = array<i64: 2, 256>}, {transform_indices = @transform_1, window_bounds = array<i64: 10, 256>}, {transform_indices = @transform_2, window_bounds = array<i64: 1, 10>}, {transform_indices = @transform_3, window_bounds = array<i64: 2, 10>}]} {
    %c0_i32 = arith.constant 0 : i32
    %0 = arith.cmpi eq, %arg2, %c0_i32 : i32
    %1 = arith.extui %0 : i1 to i32
    %c0_i32_0 = arith.constant 0 : i32
    %2 = arith.cmpi ne, %1, %c0_i32_0 : i32
    scf.if %2 {
      %cst_10 = arith.constant 0.000000e+00 : f32
      %12 = vector.broadcast %cst_10 : f32 to vector<2x10xf32>
      %c0_11 = arith.constant 0 : index
      %c0_12 = arith.constant 0 : index
      %13 = vector.load %arg7[%c0_11, %c0_12] : memref<2x10xf32, #tpu.memory_space<vmem>>, vector<2x10xf32>
      tpu.vector_store %arg7[%c0_11, %c0_12], %12 {strides = array<i32>} : memref<2x10xf32, #tpu.memory_space<vmem>>, vector<2x10xf32>,
    } else {
    }
    %c0 = arith.constant 0 : index
    %c0_1 = arith.constant 0 : index
    %3 = vector.load %arg3[%c0, %c0_1] : memref<2x256xf32, #tpu.memory_space<vmem>>, vector<2x256xf32>
    %c0_2 = arith.constant 0 : index
    %c0_3 = arith.constant 0 : index
    %4 = vector.load %arg4[%c0_2, %c0_3] : memref<10x256xf32, #tpu.memory_space<vmem>>, vector<10x256xf32>
    %c0_4 = arith.constant 0 : index
    %c0_5 = arith.constant 0 : index
    %5 = vector.load %arg7[%c0_4, %c0_5] : memref<2x10xf32, #tpu.memory_space<vmem>>, vector<2x10xf32>
    %cst = arith.constant dense<0.000000e+00> : vector<2x10xf32>
    %6 = tpu.matmul %3, %4, %cst {dimension_numbers = #tpu.dot_dimension_numbers<[1], [1], [0], [0], [0, 0, 1, 0], [], []>} : vector<2x256xf32>, vector<10x256xf32>, vector<2x10xf32> -> vector<2x10xf32>
    %7 = arith.addf %5, %6 : vector<2x10xf32>
    %c0_6 = arith.constant 0 : index
    %c0_7 = arith.constant 0 : index
    %8 = vector.load %arg7[%c0_6, %c0_7] : memref<2x10xf32, #tpu.memory_space<vmem>>, vector<2x10xf32>
    tpu.vector_store %arg7[%c0_6, %c0_7], %7 {strides = array<i32>} : memref<2x10xf32, #tpu.memory_space<vmem>>, vector<2x10xf32>,
    %c0_i32_8 = arith.constant 0 : i32
    %9 = arith.cmpi eq, %arg2, %c0_i32_8 : i32
    %10 = arith.extui %9 : i1 to i32
    %c0_i32_9 = arith.constant 0 : i32
    %11 = arith.cmpi ne, %10, %c0_i32_9 : i32
    scf.if %11 {
      %c0_10 = arith.constant 0 : index
      %c0_11 = arith.constant 0 : index
      %12 = vector.load %arg7[%c0_10, %c0_11] : memref<2x10xf32, #tpu.memory_space<vmem>>, vector<2x10xf32>
      %c0_12 = arith.constant 0 : index
      %c0_13 = arith.constant 0 : index
      %13 = vector.load %arg5[%c0_12, %c0_13] : memref<1x10xf32, #tpu.memory_space<vmem>>, vector<1x10xf32>
      %14 = vector.broadcast %13 : vector<1x10xf32> to vector<2x10xf32>
      %15 = arith.addf %12, %14 : vector<2x10xf32>
      %c0_14 = arith.constant 0 : index
      %c0_15 = arith.constant 0 : index
      %16 = vector.load %arg6[%c0_14, %c0_15] : memref<2x10xf32, #tpu.memory_space<vmem>>, vector<2x10xf32>
      tpu.vector_store %arg6[%c0_14, %c0_15], %15 {strides = array<i32>} : memref<2x10xf32, #tpu.memory_space<vmem>>, vector<2x10xf32>,
    } else {
    }
    return
  }
  func.func @transform_0(%arg0: i32, %arg1: i32, %arg2: i32) -> (i32, i32) {
    %c0_i32 = arith.constant 0 : i32
    return %arg0, %arg2 : i32, i32
  }
  func.func @transform_1(%arg0: i32, %arg1: i32, %arg2: i32) -> (i32, i32) {
    %c0_i32 = arith.constant 0 : i32
    return %arg1, %arg2 : i32, i32
  }
  func.func @transform_2(%arg0: i32, %arg1: i32, %arg2: i32) -> (i32, i32) {
    %c0_i32 = arith.constant 0 : i32
    %c0_i32_0 = arith.constant 0 : i32
    return %c0_i32, %arg1 : i32, i32
  }
  func.func @transform_3(%arg0: i32, %arg1: i32, %arg2: i32) -> (i32, i32) {
    %c0_i32 = arith.constant 0 : i32
    return %arg0, %arg1 : i32, i32
  }
}

</mosaic_0001>

<bundles_post_ra>
// kernel: adaptive_downsample_conv_head.3
= control target key start
LH: loop header
LB: loop body
LE: loop exit
PB: predicated region body
PF: predicated region fallthrough
CT: control target
= control target key end

     0   :  { %vm19_vm0 = vcmask 74752   ;;  %v170_v6 = vmov 0.0   ;;  %s225_s0 = inlined_call_operand.vmem [shape: f32[2,256], index: 0, kind: input, shape index: {}]   ;;  %s226_s1 = inlined_call_operand.vmem [shape: f32[10,256], index: 1, kind: input, shape index: {}]   ;;  %s227_s2 = inlined_call_operand.vmem [shape: f32[1,10], index: 2, kind: input, shape index: {}]   ;;  %s228_s3 = inlined_call_operand.hbm [shape: f32[2,10], index: 3, kind: output, shape index: {}]  }
   0x1   :  { %v23_v0 = vld [vmem:[%s226_s1 + $0x8] sm:$0xff]  ;;  %v25_v1 = vld [vmem:[%s226_s1 + $0x18] sm:$0x3]  ;;  %v22_v2 = vld [vmem:[%s226_s1] sm:$0xff]  ;;  %20 = vst.msk [vmem:[#allocation2] sm:$0x3] %vm19_vm0, %v170_v6 }
   0x2   :  { %v140_v3 = vpack.c.bf16 %v25_v1, %v23_v0  ;;  %v24_v4 = vld [vmem:[%s226_s1 + $0x10] sm:$0x3]  ;;  %v138_v5 = vld.sshfl [vmem:[%s225_s0] sm:$0x33 pattern:$0x76325410] }
   0x3   :  { %v142_v7 = vpack.c.bf16 %v24_v4, %v22_v2  ;;  %v35_v8 = vcombine.high %v138_v5, %v138_v5 }
   0x4   :  { %8 = vsyncpa [#allocation4], 0  ;;  %141 = vmatprep.subr.bf16.mxu0 %v140_v3  ;;  %v139_v13 = vld [vmem:[%s227_s2] ss:$0 sm:$0xff]  ;;  %s171_s0 = smov [#allocation3]  }
   0x5   :  { %143 = vmatpush1.bf16.xpose.msra.mxu0 %v142_v7  ;;  %102 = vmatprep.mubr.f32.mxu0 %v35_v8  ;;  %s130_s23 = sshll.u32 %s171_s0, 4  ;;  %s131_s23 = int_to_ptr.vmem [resolvable:$true] %s130_s23 }
   0x6   :  { %s146_s24 = scalar_lea.vmem %s131_s23, 32  ;;  %p151_p1 = scmp.lt.s32.totalorder %s131_s23, %s131_s23 }
   0x7   :  { %p147_p0 = scmp.ne.s32.totalorder %s131_s23, %s146_s24  ;;  %p152_p2 = scmp.lt.s32.totalorder %s146_s24, %s146_s24 }
   0x8   :  { %v26_v9 = vld [vmem:[#allocation2] sm:$0x3] }
   0x9   :  { %p153_p3 = por %p152_p2, %p151_p1 }
   0xb   :  { %p154_p4 = pnand %p153_p3, %p147_p0 }
   0xc   :  { %103 = vmatmul.mubr.f32.vlgmr.msra.gmra.mrb[0].mxu0 %v138_v5 }
  0xdf   :  { %v104_v10 = vpop.f32.mrb[0].mxu0 }
  0xe0   :  { %v108_v11 = vadd.f32 %v104_v10, %v26_v9  ;;  %v106_v12 = vpop.f32.mrb[1].mxu0 }
  0xe2   :  { %110 = vst.msk [vmem:[#allocation2] sm:$0x3] %vm19_vm0, %v108_v11 }
  0xe9   :  { %v114_v14 = vld [vmem:[#allocation2] sm:$0x3] }
  0xea   :  { %v122_v15 = vadd.f32 %v139_v13, %v114_v14 }
  0xec   :  { %123 = vst.msk [vmem:[#allocation3] sm:$0x3] %vm19_vm0, %v122_v15 }
  0xed   :  { %157 = shalt.err (!%p154_p4)
}
  0xee   :  { %s158_s27 = scalar_lea.hbm %s228_s3, 32 }
  0xef   :  { %p159_p5 = scmp.ne.s32.totalorder %s228_s3, %s158_s27  ;;  %p162_p6 = scmp.lt.u32.totalorder %s158_s27, %s228_s3 }
  0xf1   :  { %p164_p7 = pnand %p162_p6, %p159_p5 }
  0xf3   :  { %167 = shalt.err (!%p164_p7)
}
  0xf4   :  { %133 = dma.vmem_to_hbm [thread:$0]  %s131_s23, 32, %s228_s3, [#allocation4]  }
  0xf5   :  { %168 = dma.done.wait [#allocation4], 32  }
  0xf6   :  { %169 = vsyncadd [#allocation4], 4294967264 }
  0xf7   :  { %137 = vsyncpa [#allocation4], 1 }

// kernel: adaptive_downsample_conv_head.2
= control target key start
LH: loop header
LB: loop body
LE: loop exit
PB: predicated region body
PF: predicated region fallthrough
CT: control target
= control target key end

     0   :  { %v68_v0 = vlaneseq  ;;  %s630_s13 = smov 112   ;;  %v631_v12 = vmov 0.0   ;;  %v632_v15 = vmov 1.0|1.0   ;;  %vm87_vm6 = vcmask 130048   ;;  %s780_s1 = inlined_call_operand.vmem [shape: f32[64,32], index: 1, kind: input, shape index: {}]   ;;  %s781_s0 = inlined_call_operand.<no memory space> [shape: f32[1], index: 0, kind: input, shape index: {}]   ;;  %s782_s2 = inlined_call_operand.vmem [shape: f32[64,8], index: 2, kind: output, shape index: {}]  }
   0x1   :  { %v651_v1 = vld [vmem:[%s780_s1 + $0x20] sm:$0xff]  ;;  %v665_v5 = vld [vmem:[%s780_s1 + $0x28] sm:$0xff]  ;;  %v679_v10 = vld [vmem:[%s780_s1 + $0x30] sm:$0xff]  ;;  %s462_s27 = ssub.f32 1.0, %s781_s0  ;;  %v464_v59 = vstv %s781_s0  ;;  %vm490_vm7 = vcmask 64512  }
   0x2   :  { %v656_v2 = vld [vmem:[%s780_s1] sm:$0xff]  ;;  %36 = vrot.lane.b32.xlu0 %v651_v1, %s630_s13  ;;  %v69_v3 = vshrl.u32 %v68_v0, 7  ;;  %v72_v4 = vand.u32 127, %v68_v0  ;;  %v670_v6 = vld [vmem:[%s780_s1 + $0x8] sm:$0xff]  ;;  %v684_v11 = vld [vmem:[%s780_s1 + $0x38] sm:$0xff] }
   0x3   :  { %28 = vrot.lane.b32.xlu1 %v656_v2, %s630_s13  ;;  %v14_v21 = vld [vmem:[%s780_s1 + $0x10] sm:$0xff]  ;;  %v15_v22 = vld [vmem:[%s780_s1 + $0x18] sm:$0xff]  ;;  %s463_s28 = smul.f32 0.25, %s462_s27 }
   0x4   :  { %v70_v7 = vadd.s32 8, %v69_v3  ;;  %v73_v8 = vmul.u32 2, %v72_v4 }
   0x5   :  { %v473_v61 = vstv %s463_s28 }
   0x6   :  { %38 = vrot.lane.b32.xlu0 %v665_v5, %s630_s13  ;;  %vm74_vm0 = vcmp.eq.s32.totalorder %v69_v3, %v73_v8  ;;  %vm75_vm1 = vcmp.eq.s32.totalorder %v70_v7, %v73_v8  ;;  %v80_v9 = vadd.s32 1, %v73_v8 }
   0x7   :  { %30 = vrot.lane.b32.xlu1 %v670_v6, %s630_s13  ;;  %v503_v13 = vsel %vm74_vm0, 1.0, %v631_v12  ;;  %v504_v14 = vsel %vm75_vm1, 1.0, %v631_v12  ;;  %vm613_vm2 = vmpackc.low %vm75_vm1, %vm74_vm0 }
   0x8   :  { %614 = vmatprep.subr.msk.bf16.mxu0 %vm613_vm2, %v632_v15  ;;  %625 = vmatprep.subr.msk.bf16.mxu1 %vm613_vm2, %v632_v15  ;;  %vm81_vm3 = vcmp.eq.s32.totalorder %v69_v3, %v80_v9  ;;  %vm82_vm4 = vcmp.eq.s32.totalorder %v70_v7, %v80_v9 }
   0x9   :  { %616 = vmatpush3.bf16.msk.msra.mxu0 %vm613_vm2, %v632_v15  ;;  %626 = vmatpush3.bf16.msk.msra.mxu1 %vm613_vm2, %v632_v15  ;;  %v505_v16 = vsel %vm81_vm3, 1.0, %v631_v12  ;;  %v506_v17 = vsel %vm82_vm4, 1.0, %v631_v12  ;;  %vm686_vm5 = vmpackc.low %vm82_vm4, %vm81_vm3 }
   0xa   :  { %40 = vrot.lane.b32.xlu0 %v679_v10, %s630_s13  ;;  %v330_v19 = vadd.f32 %v505_v16, %v503_v13  ;;  %v331_v20 = vadd.f32 %v506_v17, %v504_v14  ;;  %618 = vmatprep.subr.msk.bf16.mxu1 %vm686_vm5, %v632_v15 }
   0xb   :  { %42 = vrot.lane.b32.xlu1 %v684_v11, %s630_s13 }
   0xc   :  { %v621_v23 = vpack.c.bf16 %v331_v20, %v330_v19 }
   0xe   :  { %32 = vrot.lane.b32.xlu0 %v14_v21, %s630_s13  ;;  %622 = vmatprep.subr.bf16.mxu0 %v621_v23 }
   0xf   :  { %34 = vrot.lane.b32.xlu1 %v15_v22, %s630_s13 }
  0x74   :  { %v37_v24 = vpop.permute.xlu0 %36 }
  0x75   :  { %v29_v25 = vpop.permute.xlu1 %28  ;;  %v56_v26 = vmax.f32 %v651_v1, %v37_v24  ;;  %v64_v44 = vadd.f32 %v37_v24, %v651_v1 }
  0x76   :  { %v52_v27 = vmax.f32 %v656_v2, %v29_v25  ;;  %v60_v40 = vadd.f32 %v29_v25, %v656_v2 }
  0x77   :  { %575 = vmatprep.mubr.msk.f32.mxu1 %vm87_vm6, %v56_v26 }
  0x78   :  { %569 = vmatprep.mubr.msk.f32.mxu0 %vm87_vm6, %v52_v27  ;;  %v39_v28 = vpop.permute.xlu0 %38 }
  0x79   :  { %v31_v29 = vpop.permute.xlu1 %30  ;;  %v57_v30 = vmax.f32 %v665_v5, %v39_v28  ;;  %v65_v45 = vadd.f32 %v39_v28, %v665_v5 }
  0x7a   :  { %v53_v31 = vmax.f32 %v670_v6, %v31_v29  ;;  %v61_v41 = vadd.f32 %v31_v29, %v670_v6 }
  0x7b   :  { %576 = vmatmul.mubr.msk.f32.vlgmr.msra.gmra.mrb[0].mxu1 %vm87_vm6, %v57_v30 }
  0x7c   :  { %570 = vmatmul.mubr.msk.f32.vlgmr.msra.gmra.mrb[0].mxu0 %vm87_vm6, %v53_v31  ;;  %v41_v32 = vpop.permute.xlu0 %40  ;;  %620 = vmatpush3.bf16.msk.msra.mxu1 %vm686_vm5, %v632_v15 }
  0x7d   :  { %v43_v33 = vpop.permute.xlu1 %42  ;;  %624 = vmatpush3.bf16.msra.mxu0 %v621_v23  ;;  %v58_v34 = vmax.f32 %v679_v10, %v41_v32  ;;  %v66_v46 = vadd.f32 %v41_v32, %v679_v10 }
  0x7e   :  { %v59_v35 = vmax.f32 %v684_v11, %v43_v33  ;;  %v67_v47 = vadd.f32 %v43_v33, %v684_v11 }
  0x7f   :  { %578 = vmatprep.mubr.msk.f32.mxu1 %vm87_vm6, %v58_v34 }
  0x80   :  { %v33_v36 = vpop.permute.xlu0 %32  ;;  %579 = vmatmul.mubr.msk.f32.gmra.mrb[2].mxu1 %vm87_vm6, %v59_v35 }
  0x81   :  { %v35_v37 = vpop.permute.xlu1 %34  ;;  %v54_v38 = vmax.f32 %v14_v21, %v33_v36  ;;  %585 = vmatprep.mubr.msk.f32.mxu1 %vm87_vm6, %v52_v27  ;;  %v62_v42 = vadd.f32 %v33_v36, %v14_v21 }
  0x82   :  { %v55_v39 = vmax.f32 %v15_v22, %v35_v37  ;;  %v63_v43 = vadd.f32 %v35_v37, %v15_v22 }
  0x83   :  { %572 = vmatprep.mubr.msk.f32.mxu0 %vm87_vm6, %v54_v38 }
  0x84   :  { %573 = vmatmul.mubr.msk.f32.gmra.mrb[2].mxu0 %vm87_vm6, %v55_v39  ;;  %586 = vmatmul.mubr.msk.f32.vlgmr.msra.gmra.mrb[4].mxu1 %vm87_vm6, %v53_v31 }
  0x85   :  { %588 = vmatprep.mubr.msk.f32.mxu1 %vm87_vm6, %v54_v38  ;;  %601 = vmatprep.mubr.msk.f32.mxu0 %vm87_vm6, %v60_v40 }
  0x88   :  { %589 = vmatmul.mubr.msk.f32.gmra.mrb[6].mxu1 %vm87_vm6, %v55_v39  ;;  %602 = vmatmul.mubr.msk.f32.vlgmr.msra.gmra.mrb[4].mxu0 %vm87_vm6, %v61_v41 }
  0x89   :  { %591 = vmatprep.mubr.msk.f32.mxu1 %vm87_vm6, %v56_v26  ;;  %604 = vmatprep.mubr.msk.f32.mxu0 %vm87_vm6, %v62_v42 }
  0x8c   :  { %592 = vmatmul.mubr.msk.f32.gmra.mrb[8].mxu1 %vm87_vm6, %v57_v30  ;;  %605 = vmatmul.mubr.msk.f32.gmra.mrb[6].mxu0 %vm87_vm6, %v63_v43 }
  0x8d   :  { %594 = vmatprep.mubr.msk.f32.mxu1 %vm87_vm6, %v58_v34  ;;  %607 = vmatprep.mubr.msk.f32.mxu0 %vm87_vm6, %v64_v44 }
  0x90   :  { %595 = vmatmul.mubr.msk.f32.gmra.mrb[10].mxu1 %vm87_vm6, %v59_v35  ;;  %608 = vmatmul.mubr.msk.f32.gmra.mrb[8].mxu0 %vm87_vm6, %v65_v45 }
  0x91   :  { %610 = vmatprep.mubr.msk.f32.mxu0 %vm87_vm6, %v66_v46 }
  0x94   :  { %611 = vmatmul.mubr.msk.f32.gmra.mrb[10].mxu0 %vm87_vm6, %v67_v47 }
 0x14e   :  { %v577_v49 = vpop.f32.mrb[0].mxu1 }
 0x14f   :  { %v571_v48 = vpop.f32.mrb[0].mxu0  ;;  %v198_v51 = vpop.f32.mrb[1].mxu1 }
 0x150   :  { %v178_v50 = vpop.f32.mrb[1].mxu0 }
 0x153   :  { %v580_v52 = vpop.f32.mrb[2].mxu1 }
 0x154   :  { %v208_v53 = vpop.f32.mrb[3].mxu1 }
 0x157   :  { %v574_v54 = vpop.f32.mrb[2].mxu0  ;;  %v587_v55 = vpop.f32.mrb[4].mxu1 }
 0x158   :  { %v323_v56 = vmax.f32 %v571_v48, %v587_v55  ;;  %v188_v57 = vpop.f32.mrb[3].mxu0  ;;  %v283_v58 = vpop.f32.mrb[5].mxu1 }
 0x159   :  { %v322_v60 = vmax.f32 %v178_v50, %v283_v58 }
 0x15a   :  { %v466_v0 = vmul.f32 %v464_v59, %v323_v56 }
 0x15b   :  { %v590_v62 = vpop.f32.mrb[6].mxu1  ;;  %v603_v63 = vpop.f32.mrb[4].mxu0  ;;  %v465_v5 = vmul.f32 %v464_v59, %v322_v60 }
 0x15c   :  { %v325_v1 = vmax.f32 %v574_v54, %v590_v62  ;;  %v475_v2 = vmul.f32 %v603_v63, %v473_v61  ;;  %v293_v3 = vpop.f32.mrb[7].mxu1  ;;  %v422_v4 = vpop.f32.mrb[5].mxu0 }
 0x15d   :  { %v324_v6 = vmax.f32 %v188_v57, %v293_v3  ;;  %v474_v7 = vmul.f32 %v473_v61, %v422_v4 }
 0x15e   :  { %v483_v8 = vadd.f32 %v475_v2, %v466_v0  ;;  %v468_v12 = vmul.f32 %v464_v59, %v325_v1 }
 0x15f   :  { %v482_v9 = vadd.f32 %v474_v7, %v465_v5  ;;  %v593_v10 = vpop.f32.mrb[8].mxu1  ;;  %v606_v11 = vpop.f32.mrb[6].mxu0  ;;  %v467_v17 = vmul.f32 %v464_v59, %v324_v6 }
 0x160   :  { %492 = vst.msk [vmem:[%s782_s2 + $0x8] sm:$0xff] %vm490_vm7, %v483_v8  ;;  %v327_v13 = vmax.f32 %v577_v49, %v593_v10  ;;  %v477_v14 = vmul.f32 %v606_v11, %v473_v61  ;;  %v303_v15 = vpop.f32.mrb[9].mxu1  ;;  %v432_v16 = vpop.f32.mrb[7].mxu0 }
 0x161   :  { %491 = vst.msk [vmem:[%s782_s2] sm:$0xff] %vm490_vm7, %v482_v9  ;;  %v326_v18 = vmax.f32 %v198_v51, %v303_v15  ;;  %v476_v19 = vmul.f32 %v473_v61, %v432_v16 }
 0x162   :  { %v485_v20 = vadd.f32 %v477_v14, %v468_v12  ;;  %v470_v24 = vmul.f32 %v464_v59, %v327_v13 }
 0x163   :  { %v484_v21 = vadd.f32 %v476_v19, %v467_v17  ;;  %v596_v22 = vpop.f32.mrb[10].mxu1  ;;  %v609_v23 = vpop.f32.mrb[8].mxu0  ;;  %v469_v29 = vmul.f32 %v464_v59, %v326_v18 }
 0x164   :  { %494 = vst.msk [vmem:[%s782_s2 + $0x18] sm:$0xff] %vm490_vm7, %v485_v20  ;;  %v329_v25 = vmax.f32 %v580_v52, %v596_v22  ;;  %v479_v26 = vmul.f32 %v609_v23, %v473_v61  ;;  %v313_v27 = vpop.f32.mrb[11].mxu1  ;;  %v442_v28 = vpop.f32.mrb[9].mxu0 }
 0x165   :  { %493 = vst.msk [vmem:[%s782_s2 + $0x10] sm:$0xff] %vm490_vm7, %v484_v21  ;;  %v328_v30 = vmax.f32 %v208_v53, %v313_v27  ;;  %v478_v31 = vmul.f32 %v473_v61, %v442_v28 }
 0x166   :  { %v487_v32 = vadd.f32 %v479_v26, %v470_v24  ;;  %v472_v35 = vmul.f32 %v464_v59, %v329_v25 }
 0x167   :  { %v486_v33 = vadd.f32 %v478_v31, %v469_v29  ;;  %v612_v34 = vpop.f32.mrb[10].mxu0  ;;  %v471_v38 = vmul.f32 %v464_v59, %v328_v30 }
 0x168   :  { %496 = vst.msk [vmem:[%s782_s2 + $0x28] sm:$0xff] %vm490_vm7, %v487_v32  ;;  %v481_v36 = vmul.f32 %v612_v34, %v473_v61  ;;  %v452_v37 = vpop.f32.mrb[11].mxu0 }
 0x169   :  { %495 = vst.msk [vmem:[%s782_s2 + $0x20] sm:$0xff] %vm490_vm7, %v486_v33  ;;  %v480_v39 = vmul.f32 %v473_v61, %v452_v37 }
 0x16a   :  { %v489_v40 = vadd.f32 %v481_v36, %v472_v35 }
 0x16b   :  { %v488_v41 = vadd.f32 %v480_v39, %v471_v38 }
 0x16c   :  { %498 = vst.msk [vmem:[%s782_s2 + $0x38] sm:$0xff] %vm490_vm7, %v489_v40 }
 0x16d   :  { %497 = vst.msk [vmem:[%s782_s2 + $0x30] sm:$0xff] %vm490_vm7, %v488_v41 }

</bundles_post_ra>
